<compile_context>
chip_gen: v7x
topology: tpu7x:2x2x1
jax: 0.10.0
libtpu: 0.0.40
codegen_flags: <defaults>
</compile_context>

<pallas_src>
import jax
import jax.numpy as jnp
from jax.experimental import pallas as pl
from jax.experimental.pallas import tpu as pltpu


def _upconv_kernel(x_ref, w_ref, b_ref, o_ref):
    # Single fused GEMM per M-tile on the MXU, f32 accumulation, bias add in f32,
    # cast to output dtype on store.  Works unchanged for both the plain and the
    # lane-dense (block-diagonal-weight) presentations.
    acc = jnp.dot(x_ref[...], w_ref[...], preferred_element_type=jnp.float32)
    o_ref[...] = (acc + b_ref[...]).astype(o_ref.dtype)


def _round_up(x, m):
    return (x + m - 1) // m * m


def _pick_m_tile(m, kc, cout, itemsize, granule, vmem_budget_bytes=8 << 20):
    """Pick an M-tile (in logical rows) that keeps double-buffered blocks well inside
    VMEM (conservative enough for v7x's 64 MiB physical / 32 MiB scoped VMEM).
    The tile is a multiple of `granule` so packed blocks stay (8,128)-legal."""
    per_row = 2 * kc * itemsize + 2 * cout * itemsize  # dbl-buffered in + out
    tm = vmem_budget_bytes // max(per_row, 1)
    tm = max(granule, min(2048, (tm // granule) * granule))
    # Don't over-pad small problems.
    tm = min(tm, _round_up(m, granule))
    return tm


def upconv_forward(x_nchw, weight, bias, *, filter_size=2, stride=1):
    """ConvTranspose2d(padding=0, kernel_size=filter_size, stride=1) + bias.

    x_nchw : (N, Cin, H, W)        (PyTorch NCHW)
    weight : (Cin, Cout, k, k)     (PyTorch ConvTranspose2d weight layout)
    bias   : (Cout,)
    returns: (N, Cout, H + k - 1, W + k - 1)
    """
    assert stride == 1, "only stride=1 (the module's default) is implemented"
    k = filter_size
    N, Cin, H, W = x_nchw.shape
    Cout = weight.shape[1]
    Ho, Wo = H + k - 1, W + k - 1
    M = N * Ho * Wo
    Kc = k * k * Cin  # fused contraction dimension

    # ---- glue (plain JAX, fused by XLA): NCHW -> NHWC, pad, im2col along channels ----
    x_nhwc = jnp.transpose(x_nchw, (0, 2, 3, 1))
    x_pad = jnp.pad(x_nhwc, ((0, 0), (k - 1, k - 1), (k - 1, k - 1), (0, 0)))

    # Transposed conv (stride=1) == full-padded correlation with the flipped kernel.
    x_cols, w_rows = [], []
    for a in range(k):
        for c in range(k):
            x_cols.append(x_pad[:, a:a + Ho, c:c + Wo, :].reshape(M, Cin))
            w_rows.append(weight[:, :, k - 1 - a, k - 1 - c])      # (Cin, Cout)
    x_im2col = jnp.concatenate(x_cols, axis=1)                      # (M, Kc)
    w_fused = jnp.concatenate(w_rows, axis=0)                       # (Kc, Cout)

    # ---- lane-dense packing factor r: pack r logical rows per 128-lane output row ----
    r = 1
    if Cout < 128 and 128 % Cout == 0:
        r_cand = 128 // Cout
        # Cap the contraction blow-up so we never trade a memory-bound kernel for an
        # MXU-bound one (weight stays <= ~2 MiB and MXU work stays cheap).
        if r_cand * Kc <= 4096:
            r = r_cand

    # ---- tiling: tile granule keeps blocks (8,128)-legal after packing ----
    itemsize = jnp.dtype(x_nchw.dtype).itemsize
    granule = max(256, 8 * r)
    tm = _pick_m_tile(M, Kc, Cout, itemsize, granule)
    m_pad = _round_up(M, tm)
    if m_pad != M:
        x_im2col = jnp.pad(x_im2col, ((0, m_pad - M), (0, 0)))
    num_tiles = m_pad // tm

    if r > 1:
        # Block-diagonal weight: the GEMM emits the output already in the lane-dense
        # (m/r, r*Cout = 128) layout -> unmasked full-lane stores, no relayout.
        x_in = x_im2col.reshape(m_pad // r, r * Kc)      # contiguous row-major reshape
        w_in = jnp.kron(jnp.eye(r, dtype=w_fused.dtype), w_fused)   # (r*Kc, r*Cout)
        b_in = jnp.tile(bias.astype(jnp.float32), r).reshape(1, r * Cout)
        tm_rows, kdim, ndim = tm // r, r * Kc, r * Cout
    else:
        x_in = x_im2col
        w_in = w_fused
        b_in = bias.reshape(1, Cout).astype(jnp.float32)
        tm_rows, kdim, ndim = tm, Kc, Cout

    out_flat = pl.pallas_call(
        _upconv_kernel,
        out_shape=jax.ShapeDtypeStruct((m_pad // r, ndim), x_nchw.dtype),
        grid_spec=pltpu.PrefetchScalarGridSpec(
            num_scalar_prefetch=0,
            grid=(num_tiles,),
            in_specs=[
                pl.BlockSpec((tm_rows, kdim), lambda i: (i, 0)),
                pl.BlockSpec((kdim, ndim), lambda i: (0, 0)),   # weight resident across tiles
                pl.BlockSpec((1, ndim), lambda i: (0, 0)),      # bias resident across tiles
            ],
            out_specs=pl.BlockSpec((tm_rows, ndim), lambda i: (i, 0)),
        ),
        compiler_params=pltpu.CompilerParams(
            dimension_semantics=("parallel",)),
    )(x_in, w_in, b_in)

    out_rows = out_flat.reshape(m_pad, Cout)[:M]            # unpack + drop pad rows
    out_nhwc = out_rows.reshape(N, Ho, Wo, Cout)
    return jnp.transpose(out_nhwc, (0, 3, 1, 2))            # back to NCHW


def _reference_upconv(x_nchw, weight, bias, k):
    """Direct scatter-form transposed-conv reference (pure JAX, no Pallas)."""
    N, Cin, H, W = x_nchw.shape
    Cout = weight.shape[1]
    Ho, Wo = H + k - 1, W + k - 1
    x_nhwc = jnp.transpose(x_nchw, (0, 2, 3, 1))
    y = jnp.zeros((N, Ho, Wo, Cout), jnp.float32)
    for kh in range(k):
        for kw in range(k):
            contrib = jnp.einsum('nhwc,cd->nhwd', x_nhwc, weight[:, :, kh, kw])
            y = y.at[:, kh:kh + H, kw:kw + W, :].add(contrib)
    y = y + bias.reshape(1, 1, 1, Cout)
    return jnp.transpose(y, (0, 3, 1, 2))


if __name__ == "__main__":
    key = jax.random.PRNGKey(0)
    k_x, k_w, k_b = jax.random.split(key, 3)

    N, Cin, Cout, H, W, K = 2, 4, 8, 16, 16, 2
    x = jax.random.normal(k_x, (N, Cin, H, W), jnp.float32)
    # Deterministic synthetic params matching nn.ConvTranspose2d(Cin, Cout, kernel_size=2):
    #   weight: (Cin, Cout, kH, kW), bias: (Cout,)
    weight = 0.1 * jax.random.normal(k_w, (Cin, Cout, K, K), jnp.float32)
    bias = 0.1 * jax.random.normal(k_b, (Cout,), jnp.float32)

    out = upconv_forward(x, weight, bias, filter_size=K, stride=1)
    out = jax.block_until_ready(out)

    ref = _reference_upconv(x, weight, bias, K)
    assert out.shape == (N, Cout, H + K - 1, W + K - 1), out.shape
    assert jnp.allclose(out, ref, atol=1e-4, rtol=1e-4), float(
        jnp.max(jnp.abs(out - ref)))
    print("KERNEL_OK")
</pallas_src>

<mosaic_0001>
module attributes {stable_mosaic.version = 11 : i64} {
  func.func @_upconv_kernel(%arg0: i32, %arg1: memref<48x256xf32, #tpu.memory_space<vmem>>, %arg2: memref<256x128xf32, #tpu.memory_space<vmem>>, %arg3: memref<1x128xf32, #tpu.memory_space<vmem>>, %arg4: memref<48x128xf32, #tpu.memory_space<vmem>>) attributes {dimension_semantics = [#tpu.dimension_semantics<parallel>], iteration_bounds = array<i64: 1>, scalar_prefetch = 0 : i64, scratch_operands = 0 : i64, tpu.core_type = #tpu.core_type<tc>, window_params = [{transform_indices = @transform_0, window_bounds = array<i64: 48, 256>}, {pipeline_mode = #tpu.pipeline_mode<synchronous>, transform_indices = @transform_1, window_bounds = array<i64: 256, 128>}, {pipeline_mode = #tpu.pipeline_mode<synchronous>, transform_indices = @transform_2, window_bounds = array<i64: 1, 128>}, {transform_indices = @transform_3, window_bounds = array<i64: 48, 128>}]} {
    %c0 = arith.constant 0 : index
    %c0_0 = arith.constant 0 : index
    %0 = vector.load %arg1[%c0, %c0_0] : memref<48x256xf32, #tpu.memory_space<vmem>>, vector<48x256xf32>
    %c0_1 = arith.constant 0 : index
    %c0_2 = arith.constant 0 : index
    %1 = vector.load %arg2[%c0_1, %c0_2] : memref<256x128xf32, #tpu.memory_space<vmem>>, vector<256x128xf32>
    %cst = arith.constant dense<0.000000e+00> : vector<48x128xf32>
    %2 = tpu.matmul %0, %1, %cst {dimension_numbers = #tpu.dot_dimension_numbers<[1], [0], [0], [1], [0, 0, 1, 1], [], []>} : vector<48x256xf32>, vector<256x128xf32>, vector<48x128xf32> -> vector<48x128xf32>
    %c0_3 = arith.constant 0 : index
    %c0_4 = arith.constant 0 : index
    %3 = vector.load %arg3[%c0_3, %c0_4] : memref<1x128xf32, #tpu.memory_space<vmem>>, vector<1x128xf32>
    %4 = vector.broadcast %3 : vector<1x128xf32> to vector<48x128xf32>
    %5 = arith.addf %2, %4 : vector<48x128xf32>
    %c0_5 = arith.constant 0 : index
    %c0_6 = arith.constant 0 : index
    %6 = vector.load %arg4[%c0_5, %c0_6] : memref<48x128xf32, #tpu.memory_space<vmem>>, vector<48x128xf32>
    tpu.vector_store %arg4[%c0_5, %c0_6], %5 {strides = array<i32>} : memref<48x128xf32, #tpu.memory_space<vmem>>, vector<48x128xf32>,
    return
  }
  func.func @transform_0(%arg0: i32) -> (i32, i32) {
    %c0_i32 = arith.constant 0 : i32
    %c0_i32_0 = arith.constant 0 : i32
    return %arg0, %c0_i32 : i32, i32
  }
  func.func @transform_1(%arg0: i32) -> (i32, i32) {
    %c0_i32 = arith.constant 0 : i32
    %c0_i32_0 = arith.constant 0 : i32
    %c0_i32_1 = arith.constant 0 : i32
    return %c0_i32, %c0_i32_0 : i32, i32
  }
  func.func @transform_2(%arg0: i32) -> (i32, i32) {
    %c0_i32 = arith.constant 0 : i32
    %c0_i32_0 = arith.constant 0 : i32
    %c0_i32_1 = arith.constant 0 : i32
    return %c0_i32, %c0_i32_0 : i32, i32
  }
  func.func @transform_3(%arg0: i32) -> (i32, i32) {
    %c0_i32 = arith.constant 0 : i32
    %c0_i32_0 = arith.constant 0 : i32
    return %arg0, %c0_i32 : i32, i32
  }
}

</mosaic_0001>

<bundles_post_ra>
// kernel: tpu_custom_call.1
= control target key start
LH: loop header
LB: loop body
LE: loop exit
PB: predicated region body
PF: predicated region fallthrough
CT: control target
= control target key end

     0   :  { %8 = vsyncpa [#allocation3], 0  ;;  %s463_s0 = inlined_call_operand.hbm [shape: f32[48,256], index: 0, kind: input, shape index: {}]   ;;  %s464_s1 = inlined_call_operand.hbm [shape: f32[256,128], index: 1, kind: input, shape index: {}]   ;;  %s465_s2 = inlined_call_operand.vmem [shape: f32[1,128], index: 2, kind: input, shape index: {}]   ;;  %s466_s3 = inlined_call_operand.hbm [shape: f32[48,128], index: 3, kind: output, shape index: {}]  }
   0x1   :  { %9 = vsyncpa [#allocation6], 0 }
   0x2   :  { %10 = vsyncpa [#allocation4], 0  ;;  %s391_s12 = smov [#allocation2]   ;;  %s319_s16 = scalar_lea.hbm %s463_s0, 1536 }
   0x3   :  { %s16_s13 = sshll.u32 %s391_s12, 4  ;;  %p320_p0 = scmp.ne.s32.totalorder %s463_s0, %s319_s16  ;;  %s17_s13 = int_to_ptr.vmem [resolvable:$true] %s16_s13 }
   0x4   :  { %p323_p1 = scmp.lt.u32.totalorder %s319_s16, %s463_s0 }
   0x6   :  { %p325_p2 = pnand %p323_p1, %p320_p0 }
   0x8   :  { %328 = shalt.err (!%p325_p2)
}
   0x9   :  { %s329_s21 = scalar_lea.vmem %s17_s13, 1536  ;;  %p334_p4 = scmp.lt.s32.totalorder %s17_s13, %s17_s13 }
   0xa   :  { %p330_p3 = scmp.ne.s32.totalorder %s17_s13, %s329_s21  ;;  %p335_p5 = scmp.lt.s32.totalorder %s329_s21, %s329_s21 }
   0xc   :  { %p336_p6 = por %p335_p5, %p334_p4 }
   0xe   :  { %p337_p7 = pnand %p336_p6, %p330_p3 }
  0x10   :  { %340 = shalt.err (!%p337_p7)
}
  0x11   :  { %s392_s22 = smov 256   ;;  %s393_s23 = smov 16  }
  0x12   :  { %22 = dma.hbm_to_vmem [thread:$0]  %s463_s0, 1536, %s17_s13, [#allocation3], %s392_s22, %s392_s22, %s393_s23  }
  0x13   :  { %s394_s26 = smov [#allocation5]   ;;  %s341_s30 = scalar_lea.hbm %s464_s1, 4096 }
  0x14   :  { %s28_s27 = sshll.u32 %s394_s26, 4  ;;  %p342_p8 = scmp.ne.s32.totalorder %s464_s1, %s341_s30  ;;  %s29_s27 = int_to_ptr.vmem [resolvable:$true] %s28_s27 }
  0x15   :  { %p345_p9 = scmp.lt.u32.totalorder %s341_s30, %s464_s1 }
  0x17   :  { %p347_p10 = pnand %p345_p9, %p342_p8 }
  0x19   :  { %350 = shalt.err (!%p347_p10)
}
  0x1a   :  { %s351_s8 = scalar_lea.vmem %s29_s27, 4096  ;;  %p356_p12 = scmp.lt.s32.totalorder %s29_s27, %s29_s27 }
  0x1b   :  { %p352_p11 = scmp.ne.s32.totalorder %s29_s27, %s351_s8  ;;  %p357_p13 = scmp.lt.s32.totalorder %s351_s8, %s351_s8 }
  0x1d   :  { %p358_p0 = por %p357_p13, %p356_p12 }
  0x1f   :  { %p359_p1 = pnand %p358_p0, %p352_p11 }
  0x21   :  { %362 = shalt.err (!%p359_p1)
}
  0x22   :  { %s395_s0 = smov 128   ;;  %s396_s9 = smov 8  }
  0x23   :  { %34 = dma.hbm_to_vmem [thread:$0]  %s464_s1, 4096, %s29_s27, [#allocation6], %s395_s0, %s395_s0, %s396_s9  }
  0x24   :  { %385 = dma.done.wait [#allocation3], 1536  }
  0x25   :  { %386 = vsyncadd [#allocation3], 4294965760 }
  0x26   :  { %387 = dma.done.wait [#allocation6], 4096  }
  0x27   :  { %388 = vsyncadd [#allocation6], 4294963200  ;;  %v71_v0 = vld [vmem:[#allocation5 + $0x80] sm:$0xff]  ;;  %v72_v1 = vld [vmem:[#allocation5 + $0x88] sm:$0xff] }
  0x28   :  { %v55_v2 = vld [vmem:[#allocation5] sm:$0xff]  ;;  %v264_v3 = vpack.c.bf16 %v72_v1, %v71_v0  ;;  %v56_v4 = vld [vmem:[#allocation5 + $0x8] sm:$0xff]  ;;  %v73_v5 = vld [vmem:[#allocation5 + $0x90] sm:$0xff] }
  0x29   :  { %v74_v6 = vld [vmem:[#allocation5 + $0x98] sm:$0xff]  ;;  %v266_v7 = vpack.c.bf16 %v56_v4, %v55_v2  ;;  %v57_v9 = vld [vmem:[#allocation5 + $0x10] sm:$0xff]  ;;  %v75_v11 = vld [vmem:[#allocation5 + $0xa0] sm:$0xff] }
  0x2a   :  { %v268_v8 = vpack.c.bf16 %v74_v6, %v73_v5  ;;  %v58_v10 = vld [vmem:[#allocation5 + $0x18] sm:$0xff]  ;;  %265 = vmatprep.subr.bf16.mxu0 %v264_v3  ;;  %296 = vmatprep.subr.bf16.mxu1 %v264_v3  ;;  %v76_v12 = vld [vmem:[#allocation5 + $0xa8] sm:$0xff]  ;;  %v59_v15 = vld [vmem:[#allocation5 + $0x20] sm:$0xff] }
  0x2b   :  { %267 = vmatpush3.bf16.msra.mxu0 %v266_v7  ;;  %304 = vmatpush3.bf16.msra.mxu1 %v266_v7  ;;  %v270_v13 = vpack.c.bf16 %v58_v10, %v57_v9  ;;  %v272_v14 = vpack.c.bf16 %v76_v12, %v75_v11  ;;  %v60_v16 = vld [vmem:[#allocation5 + $0x28] sm:$0xff]  ;;  %v77_v17 = vld [vmem:[#allocation5 + $0xb0] sm:$0xff]  ;;  %v78_v18 = vld [vmem:[#allocation5 + $0xb8] sm:$0xff] }
  0x2c   :  { %269 = vmatprep.subr.bf16.mxu0 %v268_v8  ;;  %297 = vmatprep.subr.bf16.mxu1 %v268_v8  ;;  %v274_v19 = vpack.c.bf16 %v60_v16, %v59_v15  ;;  %v276_v20 = vpack.c.bf16 %v78_v18, %v77_v17  ;;  %v61_v21 = vld [vmem:[#allocation5 + $0x30] sm:$0xff]  ;;  %v62_v22 = vld [vmem:[#allocation5 + $0x38] sm:$0xff]  ;;  %v79_v23 = vld [vmem:[#allocation5 + $0xc0] sm:$0xff] }
  0x2d   :  { %v80_v24 = vld [vmem:[#allocation5 + $0xc8] sm:$0xff]  ;;  %v50_v26 = vld [vmem:[#allocation2 + $0x38] sm:$0xff]  ;;  %v278_v27 = vpack.c.bf16 %v62_v22, %v61_v21  ;;  %v63_v29 = vld [vmem:[#allocation5 + $0x40] sm:$0xff] }
  0x2e   :  { %v44_v25 = vld [vmem:[#allocation2 + $0x8] sm:$0xff]  ;;  %v280_v28 = vpack.c.bf16 %v80_v24, %v79_v23  ;;  %v81_v31 = vld [vmem:[#allocation5 + $0xd0] sm:$0xff]  ;;  %v82_v32 = vld [vmem:[#allocation5 + $0xd8] sm:$0xff]  ;;  %173 = vmatprep.mubr.f32.mxu1 %v50_v26 }
  0x2f   :  { %271 = vmatpush3.bf16.msra.mxu0 %v270_v13  ;;  %305 = vmatpush3.bf16.msra.mxu1 %v270_v13  ;;  %v64_v30 = vld [vmem:[#allocation5 + $0x48] sm:$0xff]  ;;  %v284_v34 = vpack.c.bf16 %v82_v32, %v81_v31  ;;  %v65_v35 = vld [vmem:[#allocation5 + $0x50] sm:$0xff]  ;;  %v66_v36 = vld [vmem:[#allocation5 + $0x58] sm:$0xff] }
  0x30   :  { %273 = vmatprep.subr.bf16.mxu0 %v272_v14  ;;  %298 = vmatprep.subr.bf16.mxu1 %v272_v14  ;;  %v282_v33 = vpack.c.bf16 %v64_v30, %v63_v29  ;;  %v83_v37 = vld [vmem:[#allocation5 + $0xe0] sm:$0xff]  ;;  %v84_v38 = vld [vmem:[#allocation5 + $0xe8] sm:$0xff]  ;;  %v286_v39 = vpack.c.bf16 %v66_v36, %v65_v35  ;;  %v85_v43 = vld [vmem:[#allocation5 + $0xf0] sm:$0xff] }
  0x31   :  { %158 = vmatprep.mubr.f32.mxu0 %v44_v25  ;;  %v288_v40 = vpack.c.bf16 %v84_v38, %v83_v37  ;;  %v67_v41 = vld [vmem:[#allocation5 + $0x60] sm:$0xff]  ;;  %v68_v42 = vld [vmem:[#allocation5 + $0x68] sm:$0xff]  ;;  %v86_v44 = vld [vmem:[#allocation5 + $0xf8] sm:$0xff] }
  0x32   :  { %v290_v45 = vpack.c.bf16 %v68_v42, %v67_v41  ;;  %v292_v46 = vpack.c.bf16 %v86_v44, %v85_v43  ;;  %v69_v47 = vld [vmem:[#allocation5 + $0x70] sm:$0xff]  ;;  %v70_v48 = vld [vmem:[#allocation5 + $0x78] sm:$0xff]  ;;  %v43_v50 = vld [vmem:[#allocation2] sm:$0xff] }
  0x33   :  { %275 = vmatpush3.bf16.msra.mxu0 %v274_v19  ;;  %306 = vmatpush3.bf16.msra.mxu1 %v274_v19  ;;  %v294_v49 = vpack.c.bf16 %v70_v48, %v69_v47  ;;  %v49_v51 = vld [vmem:[#allocation2 + $0x30] sm:$0xff]  ;;  %v46_v52 = vld [vmem:[#allocation2 + $0x18] sm:$0xff]  ;;  %v52_v53 = vld [vmem:[#allocation2 + $0x48] sm:$0xff] }
  0x34   :  { %277 = vmatprep.subr.bf16.mxu0 %v276_v20  ;;  %299 = vmatprep.subr.bf16.mxu1 %v276_v20  ;;  %v45_v54 = vld [vmem:[#allocation2 + $0x10] sm:$0xff]  ;;  %v51_v55 = vld [vmem:[#allocation2 + $0x40] sm:$0xff]  ;;  %v48_v56 = vld [vmem:[#allocation2 + $0x28] sm:$0xff] }
  0x35   :  { %v54_v57 = vld [vmem:[#allocation2 + $0x58] sm:$0xff]  ;;  %v47_v58 = vld [vmem:[#allocation2 + $0x20] sm:$0xff]  ;;  %v53_v59 = vld [vmem:[#allocation2 + $0x50] sm:$0xff] }
  0x36   :  { %v213_v62 = vld [vmem:[%s465_s2] ss:$0 sm:$0xff]  ;;  %s397_s2 = smov [#allocation7]  }
  0x37   :  { %279 = vmatpush3.bf16.msra.mxu0 %v278_v27  ;;  %307 = vmatpush3.bf16.msra.mxu1 %v278_v27  ;;  %s200_s13 = sshll.u32 %s397_s2, 4  ;;  %s201_s13 = int_to_ptr.vmem [resolvable:$true] %s200_s13 }
  0x38   :  { %281 = vmatprep.subr.bf16.mxu0 %v280_v28  ;;  %300 = vmatprep.subr.bf16.mxu1 %v280_v28  ;;  %s363_s14 = scalar_lea.vmem %s201_s13, 768  ;;  %p368_p3 = scmp.lt.s32.totalorder %s201_s13, %s201_s13 }
  0x39   :  { %p364_p2 = scmp.ne.s32.totalorder %s201_s13, %s363_s14  ;;  %p369_p4 = scmp.lt.s32.totalorder %s363_s14, %s363_s14 }
  0x3b   :  { %283 = vmatpush3.bf16.msra.mxu0 %v282_v33  ;;  %308 = vmatpush3.bf16.msra.mxu1 %v282_v33  ;;  %p370_p5 = por %p369_p4, %p368_p3 }
  0x3c   :  { %285 = vmatprep.subr.bf16.mxu0 %v284_v34  ;;  %301 = vmatprep.subr.bf16.mxu1 %v284_v34 }
  0x3d   :  { %p371_p6 = pnand %p370_p5, %p364_p2 }
  0x3f   :  { %287 = vmatpush3.bf16.msra.mxu0 %v286_v39  ;;  %309 = vmatpush3.bf16.msra.mxu1 %v286_v39 }
  0x40   :  { %289 = vmatprep.subr.bf16.mxu0 %v288_v40  ;;  %302 = vmatprep.subr.bf16.mxu1 %v288_v40 }
  0x43   :  { %291 = vmatpush3.bf16.msra.mxu0 %v290_v45  ;;  %310 = vmatpush3.bf16.msra.mxu1 %v290_v45 }
  0x44   :  { %293 = vmatprep.subr.bf16.mxu0 %v292_v46  ;;  %303 = vmatprep.subr.bf16.mxu1 %v292_v46 }
  0x47   :  { %295 = vmatpush3.bf16.msra.mxu0 %v294_v49  ;;  %311 = vmatpush3.bf16.msra.mxu1 %v294_v49 }
  0x4a   :  { %159 = vmatmul.mubr.f32.vlgmr.msra.gmra.mrb[0].mxu0 %v43_v50  ;;  %174 = vmatmul.mubr.f32.vlgmr.msra.gmra.mrb[0].mxu1 %v49_v51 }
  0x4b   :  { %163 = vmatprep.mubr.f32.mxu0 %v46_v52  ;;  %178 = vmatprep.mubr.f32.mxu1 %v52_v53 }
  0x4e   :  { %164 = vmatmul.mubr.f32.gmra.mrb[2].mxu0 %v45_v54  ;;  %179 = vmatmul.mubr.f32.gmra.mrb[2].mxu1 %v51_v55 }
  0x4f   :  { %168 = vmatprep.mubr.f32.mxu0 %v48_v56  ;;  %183 = vmatprep.mubr.f32.mxu1 %v54_v57 }
  0x52   :  { %169 = vmatmul.mubr.f32.gmra.mrb[4].mxu0 %v47_v58  ;;  %184 = vmatmul.mubr.f32.gmra.mrb[4].mxu1 %v53_v59 }
 0x11d   :  { %v246_v60 = vpop.f32.mrb[0].mxu0  ;;  %v255_v61 = vpop.f32.mrb[0].mxu1 }
 0x11e   :  { %v247_v63 = vpop.f32.mrb[1].mxu0  ;;  %v256_v0 = vpop.f32.mrb[1].mxu1 }
 0x11f   :  { %v248_v1 = vadd.f32 %v247_v63, %v246_v60  ;;  %v257_v2 = vadd.f32 %v256_v0, %v255_v61 }
 0x121   :  { %v161_v3 = vadd.f32 %v248_v1, %v213_v62  ;;  %v176_v4 = vadd.f32 %v257_v2, %v213_v62  ;;  %v249_v5 = vpop.f32.mrb[2].mxu0  ;;  %v258_v6 = vpop.f32.mrb[2].mxu1 }
 0x122   :  { %v250_v7 = vpop.f32.mrb[3].mxu0  ;;  %v259_v8 = vpop.f32.mrb[3].mxu1 }
 0x123   :  { %189 = vst [vmem:[#allocation7] sm:$0xff] %v161_v3  ;;  %192 = vst [vmem:[#allocation7 + $0x18] sm:$0xff] %v176_v4  ;;  %v251_v9 = vadd.f32 %v250_v7, %v249_v5  ;;  %v260_v10 = vadd.f32 %v259_v8, %v258_v6 }
 0x125   :  { %v166_v11 = vadd.f32 %v251_v9, %v213_v62  ;;  %v181_v12 = vadd.f32 %v260_v10, %v213_v62  ;;  %v252_v13 = vpop.f32.mrb[4].mxu0  ;;  %v261_v14 = vpop.f32.mrb[4].mxu1 }
 0x126   :  { %v253_v15 = vpop.f32.mrb[5].mxu0  ;;  %v262_v16 = vpop.f32.mrb[5].mxu1 }
 0x127   :  { %190 = vst [vmem:[#allocation7 + $0x8] sm:$0xff] %v166_v11  ;;  %193 = vst [vmem:[#allocation7 + $0x20] sm:$0xff] %v181_v12  ;;  %v254_v17 = vadd.f32 %v253_v15, %v252_v13  ;;  %v263_v18 = vadd.f32 %v262_v16, %v261_v14 }
 0x129   :  { %v171_v19 = vadd.f32 %v254_v17, %v213_v62  ;;  %v186_v20 = vadd.f32 %v263_v18, %v213_v62 }
 0x12b   :  { %191 = vst [vmem:[#allocation7 + $0x10] sm:$0xff] %v171_v19  ;;  %194 = vst [vmem:[#allocation7 + $0x28] sm:$0xff] %v186_v20 }
 0x12c   :  { %374 = shalt.err (!%p371_p6)
}
 0x12d   :  { %s375_s17 = scalar_lea.hbm %s466_s3, 768 }
 0x12e   :  { %p376_p7 = scmp.ne.s32.totalorder %s466_s3, %s375_s17  ;;  %p379_p8 = scmp.lt.u32.totalorder %s375_s17, %s466_s3 }
 0x130   :  { %p381_p9 = pnand %p379_p8, %p376_p7 }
 0x132   :  { %384 = shalt.err (!%p381_p9)
}
 0x133   :  { %206 = dma.vmem_to_hbm [thread:$0]  %s201_s13, 768, %s466_s3, [#allocation4], %s395_s0, %s395_s0, %s396_s9  }
 0x134   :  { %389 = dma.done.wait [#allocation4], 768  }
 0x135   :  { %390 = vsyncadd [#allocation4], 4294966528 }
 0x136   :  { %210 = vsyncpa [#allocation3], 1 }
 0x137   :  { %211 = vsyncpa [#allocation6], 1 }
 0x138   :  { %212 = vsyncpa [#allocation4], 1 }

</bundles_post_ra>
